<compile_context>
chip_gen: v6e
topology: v6e:2x2x1
jax: 0.10.0
libtpu: 0.0.40
codegen_flags: <defaults>
</compile_context>

<pallas_src>
import functools

import numpy as np
import jax
import jax.numpy as jnp
from jax.experimental import pallas as pl
from jax.experimental.pallas import tpu as pltpu

TOP_K = 5  # module default top_k=5 (forward hard-codes 5 as well)


def _round_up(v, m):
    return (v + m - 1) // m * m


def _dft_matrices_fused(L, Kp, Lp):
    """Fused + zero-padded real-DFT matrices (float32).

    F2 : [Lp, 2*Kp]   x_pad @ F2 = [xf_re | xf_im]   (each half Kp lanes wide)
    G2 : [2*Kp, Lp]   [xf_re | xf_im] @ G2 = irfft(xf)  (n = L, zero-padded cols)
    """
    K = L // 2 + 1
    n = np.arange(L)[:, None]                 # [L, 1]
    k = np.arange(K)[None, :]                 # [1, K]
    ang = 2.0 * np.pi * n * k / L             # [L, K]
    Fr = np.cos(ang)                          # xf_re = x @ Fr
    Fi = -np.sin(ang)                         # xf_im = x @ Fi

    # irfft with default n = 2*(K-1) = L (L even here).
    w = np.full((K,), 2.0)
    w[0] = 1.0
    if L % 2 == 0:
        w[-1] = 1.0
    ang_inv = 2.0 * np.pi * k.T * n.T / L     # [K, L]
    Gr = (w[:, None] * np.cos(ang_inv)) / L   # season = xf_re @ Gr + xf_im @ Gi
    Gi = (-w[:, None] * np.sin(ang_inv)) / L
    Gi[0, :] = 0.0                            # c2r ignores imag of DC / Nyquist
    if L % 2 == 0:
        Gi[-1, :] = 0.0

    F2 = np.zeros((Lp, 2 * Kp), np.float32)
    F2[:L, :K] = Fr
    F2[:L, Kp:Kp + K] = Fi
    G2 = np.zeros((2 * Kp, Lp), np.float32)
    G2[:K, :L] = Gr
    G2[Kp:Kp + K, :L] = Gi
    return jnp.asarray(F2), jnp.asarray(G2)


def _vmem_limit_opts(*arr_bytes):
    """Raise the scoped-VMEM limit only when the working set needs it."""
    est = 2 * int(sum(arr_bytes))             # assume everything double-buffered
    if est <= 16 * 1024 * 1024:               # fits v5e/v6e/v7x default limits
        return {}
    # Cap below v7x's 64 MiB physical VMEM.
    # TODO(synk): for very large L (>~2048) tile the 2K frequency axis instead.
    return {"vmem_limit_bytes": int(min(est + (8 << 20), 60 << 20))}


# ----------------------------- pass 1 -----------------------------------
def _rfft_threshold_kernel(x_ref, f2_ref, xf_ref, thr_ref, *, kp, tb):
    x = x_ref[...]                                                    # [tb, Lp]
    # xf = rfft(x): ONE fused MXU matmul -> [xf_re | xf_im]
    xf = jnp.dot(x, f2_ref[...], preferred_element_type=jnp.float32)  # [tb, 2Kp]
    xf_ref[...] = xf

    re = xf[:, :kp]
    im = xf[:, kp:]
    mag2 = re * re + im * im            # |xf|^2  (sqrt dropped; monotone)

    # freq[0] = 0 quirk: zero the spectrum of GLOBAL batch row 0.
    row = jax.lax.broadcasted_iota(jnp.int32, mag2.shape, 0) + pl.program_id(0) * tb
    mag2 = jnp.where(row == 0, jnp.float32(0.0), mag2)

    # Per-row 5th-largest (with multiplicity) via TOP_K max-extraction passes.
    # Padded zero columns cannot change this value since mag2 >= 0 and K >= 5.
    neg = jnp.float32(-1.0)             # mag2 >= 0, so -1 is a safe "-inf"
    remaining = mag2
    cum = jnp.zeros((mag2.shape[0], 1), jnp.float32)
    thr = jnp.full((mag2.shape[0], 1), neg, jnp.float32)
    for _ in range(TOP_K):
        m = jnp.max(remaining, axis=1, keepdims=True)                     # [tb,1]
        cnt = jnp.sum(jnp.where(mag2 == m, 1.0, 0.0), axis=1, keepdims=True)
        cum = cum + cnt
        thr = jnp.where(jnp.logical_and(thr < 0.0, cum >= float(TOP_K)), m, thr)
        remaining = jnp.where(mag2 >= m, neg, mag2)
    thr_ref[...] = thr                                                 # [tb, 1]


# ----------------------------- pass 2 -----------------------------------
def _mask_irfft_kernel(thr_ref, x_ref, xf_ref, g2_ref, season_ref, trend_ref,
                       *, kp, tb):
    xf = xf_ref[...]                                                   # [tb, 2Kp]
    re = xf[:, :kp]
    im = xf[:, kp:]
    mag2 = re * re + im * im
    row = jax.lax.broadcasted_iota(jnp.int32, mag2.shape, 0) + pl.program_id(0) * tb
    mag2 = jnp.where(row == 0, jnp.float32(0.0), mag2)

    thr = thr_ref[0, 0]                 # global threshold (|.|^2 space), SMEM scalar
    keep = mag2 > thr                   # xf[freq <= thr] = 0  <=>  keep freq > thr
    xf_m = jnp.concatenate(
        [jnp.where(keep, re, jnp.float32(0.0)),
         jnp.where(keep, im, jnp.float32(0.0))], axis=1)               # [tb, 2Kp]

    # season = irfft(xf): ONE fused MXU matmul
    season = jnp.dot(xf_m, g2_ref[...], preferred_element_type=jnp.float32)
    season_ref[...] = season
    trend_ref[...] = x_ref[...] - season


# ----------------------------- wrapper -----------------------------------
def dft_series_decomp(x):
    """x: [B, L] float32 -> (x_season, x_trend), both [B, L] float32."""
    x = jnp.asarray(x, jnp.float32)
    B, L = x.shape
    K = L // 2 + 1
    assert K >= TOP_K, "need at least top_k rfft bins (as torch.topk would require)"

    Kp = _round_up(K, 128)              # lane-aligned half-width of fused xf
    Lp = _round_up(L, 128)              # lane-aligned time axis
    TB = _round_up(B, 8) if B <= 128 else 128
    Bp = _round_up(B, TB)
    grid = (Bp // TB,)

    F2, G2 = _dft_matrices_fused(L, Kp, Lp)
    xp = jnp.zeros((Bp, Lp), jnp.float32).at[:B, :L].set(x)

    # ---- pass 1: fused rfft matmul + per-row 5th-largest |xf|^2 -------------
    k1 = functools.partial(_rfft_threshold_kernel, kp=Kp, tb=TB)
    xf, thr_rows = pl.pallas_call(
        k1,
        out_shape=(jax.ShapeDtypeStruct((Bp, 2 * Kp), jnp.float32),
                   jax.ShapeDtypeStruct((Bp, 1), jnp.float32)),
        grid=grid,
        in_specs=[pl.BlockSpec((TB, Lp), lambda i: (i, 0)),         # x tile
                  pl.BlockSpec((Lp, 2 * Kp), lambda i: (0, 0))],    # F2 resident
        out_specs=(pl.BlockSpec((TB, 2 * Kp), lambda i: (i, 0)),
                   pl.BlockSpec((TB, 1), lambda i: (i, 0))),
        compiler_params=pltpu.CompilerParams(
            dimension_semantics=("parallel",),
            **_vmem_limit_opts(4 * Lp * 2 * Kp, 4 * TB * Lp,
                               4 * TB * 2 * Kp, 4 * TB)),
    )(xp, F2)

    # Global threshold = min over all batch rows (row 0 is forced to 0, exactly
    # like torch's topk(freq,5).values.min() over the whole tensor).
    thr_global = jnp.min(thr_rows[:B]).reshape(1, 1).astype(jnp.float32)

    # ---- pass 2: mask by global threshold + fused irfft matmul --------------
    k2 = functools.partial(_mask_irfft_kernel, kp=Kp, tb=TB)
    season_p, trend_p = pl.pallas_call(
        k2,
        out_shape=(jax.ShapeDtypeStruct((Bp, Lp), jnp.float32),
                   jax.ShapeDtypeStruct((Bp, Lp), jnp.float32)),
        grid=grid,
        in_specs=[pl.BlockSpec(memory_space=pltpu.MemorySpace.SMEM),  # thr (1,1)
                  pl.BlockSpec((TB, Lp), lambda i: (i, 0)),           # x tile
                  pl.BlockSpec((TB, 2 * Kp), lambda i: (i, 0)),       # xf tile
                  pl.BlockSpec((2 * Kp, Lp), lambda i: (0, 0))],      # G2 resident
        out_specs=(pl.BlockSpec((TB, Lp), lambda i: (i, 0)),
                   pl.BlockSpec((TB, Lp), lambda i: (i, 0))),
        compiler_params=pltpu.CompilerParams(
            dimension_semantics=("parallel",),
            **_vmem_limit_opts(4 * 2 * Kp * Lp, 4 * TB * Lp,
                               4 * TB * 2 * Kp, 2 * 4 * TB * Lp)),
    )(thr_global, xp, xf, G2)

    return season_p[:B, :L], trend_p[:B, :L]


# ----------------------------- reference ---------------------------------
def _reference(x):
    """Pure-JAX mirror of the PyTorch forward (for verification)."""
    xf = jnp.fft.rfft(x)
    freq = jnp.abs(xf)
    freq = freq.at[0].set(0)
    top_vals, _ = jax.lax.top_k(freq, TOP_K)
    thr = top_vals.min()
    xf = jnp.where(freq <= thr, jnp.zeros_like(xf), xf)
    season = jnp.fft.irfft(xf)
    trend = x - season
    return season, trend


if __name__ == "__main__":
    key = jax.random.PRNGKey(0)
    B, L = 8, 16                       # small series batch; rfft length K = 9 >= top_k
    x = jax.random.normal(key, (B, L), dtype=jnp.float32)

    season, trend = dft_series_decomp(x)
    jax.block_until_ready((season, trend))

    s_ref, t_ref = _reference(x)
    np.testing.assert_allclose(np.asarray(season), np.asarray(s_ref), atol=5e-3, rtol=5e-3)
    np.testing.assert_allclose(np.asarray(trend), np.asarray(t_ref), atol=5e-3, rtol=5e-3)

    print("KERNEL_OK")
</pallas_src>

<mosaic_0001>
module attributes {stable_mosaic.version = 11 : i64} {
  func.func @_rfft_threshold_kernel(%arg0: i32, %arg1: memref<8x128xf32, #tpu.memory_space<vmem>>, %arg2: memref<128x256xf32, #tpu.memory_space<vmem>>, %arg3: memref<8x256xf32, #tpu.memory_space<vmem>>, %arg4: memref<8x1xf32, #tpu.memory_space<vmem>>) attributes {dimension_semantics = [#tpu.dimension_semantics<parallel>], iteration_bounds = array<i64: 1>, scalar_prefetch = 0 : i64, scratch_operands = 0 : i64, tpu.core_type = #tpu.core_type<tc>, window_params = [{transform_indices = @transform_0, window_bounds = array<i64: 8, 128>}, {pipeline_mode = #tpu.pipeline_mode<synchronous>, transform_indices = @transform_1, window_bounds = array<i64: 128, 256>}, {transform_indices = @transform_2, window_bounds = array<i64: 8, 256>}, {transform_indices = @transform_3, window_bounds = array<i64: 8, 1>}]} {
    %c0 = arith.constant 0 : index
    %c0_0 = arith.constant 0 : index
    %0 = vector.load %arg1[%c0, %c0_0] : memref<8x128xf32, #tpu.memory_space<vmem>>, vector<8x128xf32>
    %c0_1 = arith.constant 0 : index
    %c0_2 = arith.constant 0 : index
    %1 = vector.load %arg2[%c0_1, %c0_2] : memref<128x256xf32, #tpu.memory_space<vmem>>, vector<128x256xf32>
    %cst = arith.constant dense<0.000000e+00> : vector<8x256xf32>
    %2 = tpu.matmul %0, %1, %cst {dimension_numbers = #tpu.dot_dimension_numbers<[1], [0], [0], [1], [0, 0, 1, 1], [], []>} : vector<8x128xf32>, vector<128x256xf32>, vector<8x256xf32> -> vector<8x256xf32>
    %c0_3 = arith.constant 0 : index
    %c0_4 = arith.constant 0 : index
    %3 = vector.load %arg3[%c0_3, %c0_4] : memref<8x256xf32, #tpu.memory_space<vmem>>, vector<8x256xf32>
    tpu.vector_store %arg3[%c0_3, %c0_4], %2 {strides = array<i32>} : memref<8x256xf32, #tpu.memory_space<vmem>>, vector<8x256xf32>,
    %4 = vector.extract_strided_slice %2 {offsets = [0, 0], sizes = [8, 128], strides = [1, 1]} : vector<8x256xf32> to vector<8x128xf32>
    %5 = vector.extract_strided_slice %2 {offsets = [0, 128], sizes = [8, 128], strides = [1, 1]} : vector<8x256xf32> to vector<8x128xf32>
    %6 = arith.mulf %4, %4 : vector<8x128xf32>
    %7 = arith.mulf %5, %5 : vector<8x128xf32>
    %8 = arith.addf %6, %7 : vector<8x128xf32>
    %9 = tpu.iota {dimensions = array<i32: 0>} : vector<8x128xi32>
    %c8_i32 = arith.constant 8 : i32
    %10 = arith.muli %arg0, %c8_i32 : i32
    %11 = vector.broadcast %10 : i32 to vector<8x128xi32>
    %12 = arith.addi %9, %11 : vector<8x128xi32>
    %c0_i32 = arith.constant 0 : i32
    %13 = vector.broadcast %c0_i32 : i32 to vector<8x128xi32>
    %14 = arith.cmpi eq, %12, %13 : vector<8x128xi32>
    %cst_5 = arith.constant 0.000000e+00 : f32
    %15 = vector.broadcast %cst_5 : f32 to vector<8x128xf32>
    %16 = arith.select %14, %15, %8 : vector<8x128xi1>, vector<8x128xf32>
    %cst_6 = arith.constant 0.000000e+00 : f32
    %17 = vector.broadcast %cst_6 : f32 to vector<8x1xf32>
    %cst_7 = arith.constant -1.000000e+00 : f32
    %18 = vector.broadcast %cst_7 : f32 to vector<8x1xf32>
    %cst_8 = arith.constant dense<0xFF800000> : vector<8xf32>
    %19 = vector.multi_reduction <maximumf>, %16, %cst_8 [1] : vector<8x128xf32> to vector<8xf32>
    %20 = vector.shape_cast %19 : vector<8xf32> to vector<8x1xf32>
    %21 = vector.broadcast %20 : vector<8x1xf32> to vector<8x128xf32>
    %22 = arith.cmpf oeq, %16, %21 : vector<8x128xf32>
    %cst_9 = arith.constant 1.000000e+00 : f32
    %cst_10 = arith.constant 0.000000e+00 : f32
    %23 = vector.broadcast %cst_9 : f32 to vector<8x128xf32>
    %24 = vector.broadcast %cst_10 : f32 to vector<8x128xf32>
    %25 = arith.select %22, %23, %24 : vector<8x128xi1>, vector<8x128xf32>
    %cst_11 = arith.constant dense<0.000000e+00> : vector<8xf32>
    %26 = vector.multi_reduction <add>, %25, %cst_11 [1] : vector<8x128xf32> to vector<8xf32>
    %27 = vector.shape_cast %26 : vector<8xf32> to vector<8x1xf32>
    %28 = arith.addf %17, %27 : vector<8x1xf32>
    %cst_12 = arith.constant 0.000000e+00 : f32
    %29 = vector.broadcast %cst_12 : f32 to vector<8x1xf32>
    %30 = arith.cmpf olt, %18, %29 : vector<8x1xf32>
    %cst_13 = arith.constant 5.000000e+00 : f32
    %31 = vector.broadcast %cst_13 : f32 to vector<8x1xf32>
    %32 = arith.cmpf oge, %28, %31 : vector<8x1xf32>
    %33 = arith.andi %30, %32 : vector<8x1xi1>
    %34 = arith.select %33, %20, %18 : vector<8x1xi1>, vector<8x1xf32>
    %35 = vector.broadcast %20 : vector<8x1xf32> to vector<8x128xf32>
    %36 = arith.cmpf oge, %16, %35 : vector<8x128xf32>
    %cst_14 = arith.constant -1.000000e+00 : f32
    %37 = vector.broadcast %cst_14 : f32 to vector<8x128xf32>
    %38 = arith.select %36, %37, %16 : vector<8x128xi1>, vector<8x128xf32>
    %cst_15 = arith.constant dense<0xFF800000> : vector<8xf32>
    %39 = vector.multi_reduction <maximumf>, %38, %cst_15 [1] : vector<8x128xf32> to vector<8xf32>
    %40 = vector.shape_cast %39 : vector<8xf32> to vector<8x1xf32>
    %41 = vector.broadcast %40 : vector<8x1xf32> to vector<8x128xf32>
    %42 = arith.cmpf oeq, %16, %41 : vector<8x128xf32>
    %cst_16 = arith.constant 1.000000e+00 : f32
    %cst_17 = arith.constant 0.000000e+00 : f32
    %43 = vector.broadcast %cst_16 : f32 to vector<8x128xf32>
    %44 = vector.broadcast %cst_17 : f32 to vector<8x128xf32>
    %45 = arith.select %42, %43, %44 : vector<8x128xi1>, vector<8x128xf32>
    %cst_18 = arith.constant dense<0.000000e+00> : vector<8xf32>
    %46 = vector.multi_reduction <add>, %45, %cst_18 [1] : vector<8x128xf32> to vector<8xf32>
    %47 = vector.shape_cast %46 : vector<8xf32> to vector<8x1xf32>
    %48 = arith.addf %28, %47 : vector<8x1xf32>
    %cst_19 = arith.constant 0.000000e+00 : f32
    %49 = vector.broadcast %cst_19 : f32 to vector<8x1xf32>
    %50 = arith.cmpf olt, %34, %49 : vector<8x1xf32>
    %cst_20 = arith.constant 5.000000e+00 : f32
    %51 = vector.broadcast %cst_20 : f32 to vector<8x1xf32>
    %52 = arith.cmpf oge, %48, %51 : vector<8x1xf32>
    %53 = arith.andi %50, %52 : vector<8x1xi1>
    %54 = arith.select %53, %40, %34 : vector<8x1xi1>, vector<8x1xf32>
    %55 = vector.broadcast %40 : vector<8x1xf32> to vector<8x128xf32>
    %56 = arith.cmpf oge, %16, %55 : vector<8x128xf32>
    %cst_21 = arith.constant -1.000000e+00 : f32
    %57 = vector.broadcast %cst_21 : f32 to vector<8x128xf32>
    %58 = arith.select %56, %57, %16 : vector<8x128xi1>, vector<8x128xf32>
    %cst_22 = arith.constant dense<0xFF800000> : vector<8xf32>
    %59 = vector.multi_reduction <maximumf>, %58, %cst_22 [1] : vector<8x128xf32> to vector<8xf32>
    %60 = vector.shape_cast %59 : vector<8xf32> to vector<8x1xf32>
    %61 = vector.broadcast %60 : vector<8x1xf32> to vector<8x128xf32>
    %62 = arith.cmpf oeq, %16, %61 : vector<8x128xf32>
    %cst_23 = arith.constant 1.000000e+00 : f32
    %cst_24 = arith.constant 0.000000e+00 : f32
    %63 = vector.broadcast %cst_23 : f32 to vector<8x128xf32>
    %64 = vector.broadcast %cst_24 : f32 to vector<8x128xf32>
    %65 = arith.select %62, %63, %64 : vector<8x128xi1>, vector<8x128xf32>
    %cst_25 = arith.constant dense<0.000000e+00> : vector<8xf32>
    %66 = vector.multi_reduction <add>, %65, %cst_25 [1] : vector<8x128xf32> to vector<8xf32>
    %67 = vector.shape_cast %66 : vector<8xf32> to vector<8x1xf32>
    %68 = arith.addf %48, %67 : vector<8x1xf32>
    %cst_26 = arith.constant 0.000000e+00 : f32
    %69 = vector.broadcast %cst_26 : f32 to vector<8x1xf32>
    %70 = arith.cmpf olt, %54, %69 : vector<8x1xf32>
    %cst_27 = arith.constant 5.000000e+00 : f32
    %71 = vector.broadcast %cst_27 : f32 to vector<8x1xf32>
    %72 = arith.cmpf oge, %68, %71 : vector<8x1xf32>
    %73 = arith.andi %70, %72 : vector<8x1xi1>
    %74 = arith.select %73, %60, %54 : vector<8x1xi1>, vector<8x1xf32>
    %75 = vector.broadcast %60 : vector<8x1xf32> to vector<8x128xf32>
    %76 = arith.cmpf oge, %16, %75 : vector<8x128xf32>
    %cst_28 = arith.constant -1.000000e+00 : f32
    %77 = vector.broadcast %cst_28 : f32 to vector<8x128xf32>
    %78 = arith.select %76, %77, %16 : vector<8x128xi1>, vector<8x128xf32>
    %cst_29 = arith.constant dense<0xFF800000> : vector<8xf32>
    %79 = vector.multi_reduction <maximumf>, %78, %cst_29 [1] : vector<8x128xf32> to vector<8xf32>
    %80 = vector.shape_cast %79 : vector<8xf32> to vector<8x1xf32>
    %81 = vector.broadcast %80 : vector<8x1xf32> to vector<8x128xf32>
    %82 = arith.cmpf oeq, %16, %81 : vector<8x128xf32>
    %cst_30 = arith.constant 1.000000e+00 : f32
    %cst_31 = arith.constant 0.000000e+00 : f32
    %83 = vector.broadcast %cst_30 : f32 to vector<8x128xf32>
    %84 = vector.broadcast %cst_31 : f32 to vector<8x128xf32>
    %85 = arith.select %82, %83, %84 : vector<8x128xi1>, vector<8x128xf32>
    %cst_32 = arith.constant dense<0.000000e+00> : vector<8xf32>
    %86 = vector.multi_reduction <add>, %85, %cst_32 [1] : vector<8x128xf32> to vector<8xf32>
    %87 = vector.shape_cast %86 : vector<8xf32> to vector<8x1xf32>
    %88 = arith.addf %68, %87 : vector<8x1xf32>
    %cst_33 = arith.constant 0.000000e+00 : f32
    %89 = vector.broadcast %cst_33 : f32 to vector<8x1xf32>
    %90 = arith.cmpf olt, %74, %89 : vector<8x1xf32>
    %cst_34 = arith.constant 5.000000e+00 : f32
    %91 = vector.broadcast %cst_34 : f32 to vector<8x1xf32>
    %92 = arith.cmpf oge, %88, %91 : vector<8x1xf32>
    %93 = arith.andi %90, %92 : vector<8x1xi1>
    %94 = arith.select %93, %80, %74 : vector<8x1xi1>, vector<8x1xf32>
    %95 = vector.broadcast %80 : vector<8x1xf32> to vector<8x128xf32>
    %96 = arith.cmpf oge, %16, %95 : vector<8x128xf32>
    %cst_35 = arith.constant -1.000000e+00 : f32
    %97 = vector.broadcast %cst_35 : f32 to vector<8x128xf32>
    %98 = arith.select %96, %97, %16 : vector<8x128xi1>, vector<8x128xf32>
    %cst_36 = arith.constant dense<0xFF800000> : vector<8xf32>
    %99 = vector.multi_reduction <maximumf>, %98, %cst_36 [1] : vector<8x128xf32> to vector<8xf32>
    %100 = vector.shape_cast %99 : vector<8xf32> to vector<8x1xf32>
    %101 = vector.broadcast %100 : vector<8x1xf32> to vector<8x128xf32>
    %102 = arith.cmpf oeq, %16, %101 : vector<8x128xf32>
    %cst_37 = arith.constant 1.000000e+00 : f32
    %cst_38 = arith.constant 0.000000e+00 : f32
    %103 = vector.broadcast %cst_37 : f32 to vector<8x128xf32>
    %104 = vector.broadcast %cst_38 : f32 to vector<8x128xf32>
    %105 = arith.select %102, %103, %104 : vector<8x128xi1>, vector<8x128xf32>
    %cst_39 = arith.constant dense<0.000000e+00> : vector<8xf32>
    %106 = vector.multi_reduction <add>, %105, %cst_39 [1] : vector<8x128xf32> to vector<8xf32>
    %107 = vector.shape_cast %106 : vector<8xf32> to vector<8x1xf32>
    %108 = arith.addf %88, %107 : vector<8x1xf32>
    %cst_40 = arith.constant 0.000000e+00 : f32
    %109 = vector.broadcast %cst_40 : f32 to vector<8x1xf32>
    %110 = arith.cmpf olt, %94, %109 : vector<8x1xf32>
    %cst_41 = arith.constant 5.000000e+00 : f32
    %111 = vector.broadcast %cst_41 : f32 to vector<8x1xf32>
    %112 = arith.cmpf oge, %108, %111 : vector<8x1xf32>
    %113 = arith.andi %110, %112 : vector<8x1xi1>
    %114 = arith.select %113, %100, %94 : vector<8x1xi1>, vector<8x1xf32>
    %c0_42 = arith.constant 0 : index
    %c0_43 = arith.constant 0 : index
    %115 = vector.load %arg4[%c0_42, %c0_43] : memref<8x1xf32, #tpu.memory_space<vmem>>, vector<8x1xf32>
    tpu.vector_store %arg4[%c0_42, %c0_43], %114 {strides = array<i32>} : memref<8x1xf32, #tpu.memory_space<vmem>>, vector<8x1xf32>,
    return
  }
  func.func @transform_0(%arg0: i32) -> (i32, i32) {
    %c0_i32 = arith.constant 0 : i32
    %c0_i32_0 = arith.constant 0 : i32
    return %arg0, %c0_i32 : i32, i32
  }
  func.func @transform_1(%arg0: i32) -> (i32, i32) {
    %c0_i32 = arith.constant 0 : i32
    %c0_i32_0 = arith.constant 0 : i32
    %c0_i32_1 = arith.constant 0 : i32
    return %c0_i32, %c0_i32_0 : i32, i32
  }
  func.func @transform_2(%arg0: i32) -> (i32, i32) {
    %c0_i32 = arith.constant 0 : i32
    %c0_i32_0 = arith.constant 0 : i32
    return %arg0, %c0_i32 : i32, i32
  }
  func.func @transform_3(%arg0: i32) -> (i32, i32) {
    %c0_i32 = arith.constant 0 : i32
    %c0_i32_0 = arith.constant 0 : i32
    return %arg0, %c0_i32 : i32, i32
  }
}

</mosaic_0001>

<bundles_post_ra>
// kernel: tpu_custom_call.1
= control target key start
LH: loop header
LB: loop body
LE: loop exit
PB: predicated region body
PF: predicated region fallthrough
CT: control target
= control target key end

     0   :  { %9 = vsyncpa [#allocation3], 0  ;;  %s357_s0 = inlined_call_operand.hbm [shape: f32[8,128], index: 0, kind: input, shape index: {}]   ;;  %s358_s1 = inlined_call_operand.hbm [shape: f32[128,256], index: 1, kind: input, shape index: {}]   ;;  %s359_s2 = inlined_call_operand.hbm [shape: f32[8,256], index: 2, kind: output, shape index: {0}]   ;;  %s360_s3 = inlined_call_operand.vmem [shape: f32[8,1], index: 3, kind: output, shape index: {1}]  }
   0x1   :  { %10 = vsyncpa [#allocation6], 0 }
   0x2   :  { %11 = vsyncpa [#allocation4], 0  ;;  %s313_s12 = smov [#allocation2]   ;;  %s314_s14 = smov [#allocation5]  }
   0x3   :  { %s18_s13 = sshll.u32 %s313_s12, 4  ;;  %s27_s15 = sshll.u32 %s314_s14, 4  ;;  %s19_s13 = int_to_ptr.vmem [resolvable:$true] %s18_s13  ;;  %s28_s15 = int_to_ptr.vmem [resolvable:$true] %s27_s15 }
   0x4   :  { %s255_s16 = scalar_lea.vmem %s19_s13, 128  ;;  %p260_p1 = scmp.lt.s32.totalorder %s19_s13, %s19_s13 }
   0x5   :  { %p256_p0 = scmp.ne.s32.totalorder %s19_s13, %s255_s16  ;;  %p261_p2 = scmp.lt.s32.totalorder %s255_s16, %s255_s16 }
   0x7   :  { %p262_p3 = por %p261_p2, %p260_p1 }
   0x9   :  { %p263_p4 = pnand %p262_p3, %p256_p0 }
   0xb   :  { %266 = shalt.err (!%p263_p4)
}
   0xc   :  { %21 = dma.hbm_to_vmem [thread:$0]  %s357_s0, 128, %s19_s13, [#allocation3]  }
   0xd   :  { %s275_s19 = scalar_lea.vmem %s28_s15, 4096  ;;  %p280_p6 = scmp.lt.s32.totalorder %s28_s15, %s28_s15 }
   0xe   :  { %p276_p5 = scmp.ne.s32.totalorder %s28_s15, %s275_s19  ;;  %p281_p7 = scmp.lt.s32.totalorder %s275_s19, %s275_s19 }
  0x10   :  { %p282_p8 = por %p281_p7, %p280_p6 }
  0x12   :  { %p283_p9 = pnand %p282_p8, %p276_p5 }
  0x14   :  { %286 = shalt.err (!%p283_p9)
}
  0x15   :  { %s315_s20 = smov 256   ;;  %s316_s21 = smov 16  }
  0x16   :  { %33 = dma.hbm_to_vmem [thread:$0]  %s358_s1, 4096, %s28_s15, [#allocation6], %s315_s20, %s315_s20, %s316_s21  }
  0x17   :  { %307 = dma.done.wait [#allocation3], 128  }
  0x18   :  { %308 = vsyncadd [#allocation3], 4294967168 }
  0x19   :  { %309 = dma.done.wait [#allocation6], 4096  }
  0x1a   :  { %310 = vsyncadd [#allocation6], 4294963200  ;;  %v317_v0 = vmov 0.0   ;;  %v72_v1 = vld [vmem:[#allocation5 + $0xf8] sm:$0xff]  ;;  %v71_v2 = vld [vmem:[#allocation5 + $0xf0] sm:$0xff]  ;;  %v149_v34 = vlaneseq  ;;  %s318_s0 = smov [#allocation7]  }
  0x1b   :  { %137 = vmatprep.mubr.f32.mxu0 %v317_v0  ;;  %v70_v3 = vld [vmem:[#allocation5 + $0xe8] sm:$0xff]  ;;  %73 = vmatprep.subr.mxu0 %v72_v1  ;;  %v69_v4 = vld [vmem:[#allocation5 + $0xe0] sm:$0xff]  ;;  %v68_v5 = vld [vmem:[#allocation5 + $0xd8] sm:$0xff]  ;;  %s227_s1 = sshll.u32 %s318_s0, 4  ;;  %s228_s1 = int_to_ptr.vmem [resolvable:$true] %s227_s1 }
  0x1c   :  { %74 = vmatpush1.msra.mxu0 %v71_v2  ;;  %v67_v6 = vld [vmem:[#allocation5 + $0xd0] sm:$0xff]  ;;  %v66_v7 = vld [vmem:[#allocation5 + $0xc8] sm:$0xff]  ;;  %v65_v8 = vld [vmem:[#allocation5 + $0xc0] sm:$0xff]  ;;  %v150_v36 = vshrl.u32 %v149_v34, 7  ;;  %s287_s24 = scalar_lea.vmem %s228_s1, 256  ;;  %p292_p11 = scmp.lt.s32.totalorder %s228_s1, %s228_s1 }
  0x1d   :  { %75 = vmatprep.subr.mxu0 %v70_v3  ;;  %v64_v9 = vld [vmem:[#allocation5 + $0xb8] sm:$0xff]  ;;  %v63_v10 = vld [vmem:[#allocation5 + $0xb0] sm:$0xff]  ;;  %v62_v11 = vld [vmem:[#allocation5 + $0xa8] sm:$0xff]  ;;  %p288_p10 = scmp.ne.s32.totalorder %s228_s1, %s287_s24  ;;  %p293_p12 = scmp.lt.s32.totalorder %s287_s24, %s287_s24 }
  0x1e   :  { %76 = vmatpush1.msra.mxu0 %v69_v4  ;;  %v61_v12 = vld [vmem:[#allocation5 + $0xa0] sm:$0xff]  ;;  %v60_v13 = vld [vmem:[#allocation5 + $0x98] sm:$0xff]  ;;  %v59_v14 = vld [vmem:[#allocation5 + $0x90] sm:$0xff]  ;;  %vm154_vm0 = vcmp.eq.s32.totalorder %v150_v36, 0 }
  0x1f   :  { %77 = vmatprep.subr.mxu0 %v68_v5  ;;  %v58_v15 = vld [vmem:[#allocation5 + $0x88] sm:$0xff]  ;;  %v57_v16 = vld [vmem:[#allocation5 + $0x80] sm:$0xff]  ;;  %v56_v17 = vld [vmem:[#allocation5 + $0x78] sm:$0xff]  ;;  %p294_p13 = por %p293_p12, %p292_p11 }
  0x20   :  { %78 = vmatpush1.msra.mxu0 %v67_v6  ;;  %v55_v18 = vld [vmem:[#allocation5 + $0x70] sm:$0xff]  ;;  %v54_v19 = vld [vmem:[#allocation5 + $0x68] sm:$0xff]  ;;  %v53_v20 = vld [vmem:[#allocation5 + $0x60] sm:$0xff] }
  0x21   :  { %79 = vmatprep.subr.mxu0 %v66_v7  ;;  %v52_v21 = vld [vmem:[#allocation5 + $0x58] sm:$0xff]  ;;  %v51_v22 = vld [vmem:[#allocation5 + $0x50] sm:$0xff]  ;;  %v50_v23 = vld [vmem:[#allocation5 + $0x48] sm:$0xff]  ;;  %p295_p0 = pnand %p294_p13, %p288_p10 }
  0x22   :  { %80 = vmatpush1.msra.mxu0 %v65_v8  ;;  %v49_v24 = vld [vmem:[#allocation5 + $0x40] sm:$0xff]  ;;  %v48_v25 = vld [vmem:[#allocation5 + $0x38] sm:$0xff]  ;;  %v47_v26 = vld [vmem:[#allocation5 + $0x30] sm:$0xff] }
  0x23   :  { %81 = vmatprep.subr.mxu0 %v64_v9  ;;  %v46_v27 = vld [vmem:[#allocation5 + $0x28] sm:$0xff]  ;;  %v45_v28 = vld [vmem:[#allocation5 + $0x20] sm:$0xff]  ;;  %v44_v29 = vld [vmem:[#allocation5 + $0x18] sm:$0xff] }
  0x24   :  { %82 = vmatpush1.msra.mxu0 %v63_v10  ;;  %v43_v30 = vld [vmem:[#allocation5 + $0x10] sm:$0xff]  ;;  %v42_v31 = vld [vmem:[#allocation5 + $0x8] sm:$0xff]  ;;  %v41_v32 = vld [vmem:[#allocation5] sm:$0xff] }
  0x25   :  { %83 = vmatprep.subr.mxu0 %v62_v11  ;;  %v40_v33 = vld [vmem:[#allocation2] sm:$0xff] }
  0x26   :  { %84 = vmatpush1.msra.mxu0 %v61_v12 }
  0x27   :  { %85 = vmatprep.subr.mxu0 %v60_v13 }
  0x28   :  { %86 = vmatpush1.msra.mxu0 %v59_v14 }
  0x29   :  { %87 = vmatprep.subr.mxu0 %v58_v15 }
  0x2a   :  { %88 = vmatpush1.msra.mxu0 %v57_v16 }
  0x2b   :  { %89 = vmatprep.subr.mxu0 %v56_v17 }
  0x2c   :  { %90 = vmatpush1.msra.mxu0 %v55_v18 }
  0x2d   :  { %91 = vmatprep.subr.mxu0 %v54_v19 }
  0x2e   :  { %92 = vmatpush1.msra.mxu0 %v53_v20 }
  0x2f   :  { %93 = vmatprep.subr.mxu0 %v52_v21 }
  0x30   :  { %94 = vmatpush1.msra.mxu0 %v51_v22 }
  0x31   :  { %95 = vmatprep.subr.mxu0 %v50_v23 }
  0x32   :  { %96 = vmatpush1.msra.mxu0 %v49_v24 }
  0x33   :  { %97 = vmatprep.subr.mxu0 %v48_v25 }
  0x34   :  { %98 = vmatpush1.msra.mxu0 %v47_v26 }
  0x35   :  { %99 = vmatprep.subr.mxu0 %v46_v27 }
  0x36   :  { %100 = vmatpush1.msra.mxu0 %v45_v28 }
  0x37   :  { %101 = vmatprep.subr.mxu0 %v44_v29 }
  0x38   :  { %102 = vmatpush1.msra.mxu0 %v43_v30 }
  0x39   :  { %103 = vmatprep.subr.mxu0 %v42_v31 }
  0x3a   :  { %104 = vmatpush1.msra.mxu0 %v41_v32 }
  0x3b   :  { %138 = vmatmul.mubr.f32.vlgmr.msra.gmra.mxu0 %v40_v33 }
  0xfb   :  { %v139_v35 = vpop.f32.mrf.mxu0 }
  0xfc   :  { %144 = vst [vmem:[#allocation7] sm:$0xff] %v139_v35  ;;  %v146_v38 = vmul.f32 %v139_v35, %v139_v35 }
  0xfd   :  { %v141_v37 = vpop.f32.mrf.mxu0 }
  0xfe   :  { %145 = vst [vmem:[#allocation7 + $0x8] sm:$0xff] %v141_v37  ;;  %v147_v39 = vmul.f32 %v141_v37, %v141_v37 }
 0x100   :  { %v148_v40 = vadd.f32 %v147_v39, %v146_v38 }
 0x102   :  { %v155_v41 = vsel %vm154_vm0, 0.0, %v148_v40 }
 0x103   :  { %156 = vmax.xlane.f32.xlu0 %v155_v41 }
 0x18c   :  { %v157_v42 = vpop.xlane.xlu0 %156 }
 0x18d   :  { %vm167_vm1 = vcmp.ge.f32.partialorder %v155_v41, %v157_v42  ;;  %vm158_vm4 = vcmp.eq.f32.partialorder %v155_v41, %v157_v42 }
 0x18e   :  { %v168_v43 = vsel %vm167_vm1, -1.0, %v155_v41  ;;  %v159_v48 = vsel %vm158_vm4, 1.0, %v317_v0 }
 0x18f   :  { %169 = vmax.xlane.f32.xlu0 %v168_v43 }
 0x218   :  { %v170_v44 = vpop.xlane.xlu0 %169 }
 0x219   :  { %vm180_vm2 = vcmp.ge.f32.partialorder %v155_v41, %v170_v44  ;;  %vm171_vm7 = vcmp.eq.f32.partialorder %v155_v41, %v170_v44 }
 0x21a   :  { %v181_v45 = vsel %vm180_vm2, -1.0, %v155_v41  ;;  %v172_v52 = vsel %vm171_vm7, 1.0, %v317_v0 }
 0x21b   :  { %182 = vmax.xlane.f32.xlu1 %v181_v45 }
 0x2a4   :  { %v183_v46 = vpop.xlane.xlu1 %182 }
 0x2a5   :  { %vm193_vm3 = vcmp.ge.f32.partialorder %v155_v41, %v183_v46  ;;  %vm184_vm5 = vcmp.eq.f32.partialorder %v155_v41, %v183_v46 }
 0x2a6   :  { %v194_v47 = vsel %vm193_vm3, -1.0, %v155_v41  ;;  %v185_v49 = vsel %vm184_vm5, 1.0, %v317_v0 }
 0x2a7   :  { %195 = vmax.xlane.f32.xlu1 %v194_v47 }
 0x2ab   :  { %160 = vadd.xlane.f32.xlu1 %v159_v48 }
 0x2af   :  { %186 = vadd.xlane.f32.xlu1 %v185_v49 }
 0x330   :  { %v196_v50 = vpop.xlane.xlu1 %195 }
 0x331   :  { %vm206_vm6 = vcmp.ge.f32.partialorder %v155_v41, %v196_v50  ;;  %vm197_vm8 = vcmp.eq.f32.partialorder %v155_v41, %v196_v50 }
 0x332   :  { %v207_v51 = vsel %vm206_vm6, -1.0, %v155_v41  ;;  %v198_v53 = vsel %vm197_vm8, 1.0, %v317_v0 }
 0x333   :  { %208 = vmax.xlane.f32.xlu0 %v207_v51 }
 0x337   :  { %173 = vadd.xlane.f32.xlu0 %v172_v52 }
 0x33b   :  { %199 = vadd.xlane.f32.xlu0 %v198_v53 }
 0x3bc   :  { %v209_v54 = vpop.xlane.xlu0 %208 }
 0x3bd   :  { %vm210_vm9 = vcmp.eq.f32.partialorder %v155_v41, %v209_v54 }
 0x3be   :  { %v211_v55 = vsel %vm210_vm9, 1.0, %v317_v0 }
 0x3bf   :  { %212 = vadd.xlane.f32.xlu1 %v211_v55 }
 0x3c0   :  { %298 = shalt.err (!%p295_p0)
}
 0x3c1   :  { %230 = dma.vmem_to_hbm [thread:$0]  %s228_s1, 256, %s359_s2, [#allocation4]   ;;  %v161_v56 = vpop.xlane.xlu1 %160  ;;  %v174_v57 = vpop.xlane.xlu0 %173  ;;  %vm219_vm5 = vcmask 7168  }
 0x3c2   :  { %vm164_vm10 = vcmp.ge.f32.partialorder %v161_v56, 5.0  ;;  %v175_v58 = vadd.f32 %v174_v57, %v161_v56 }
 0x3c3   :  { %v166_v59 = vsel %vm164_vm10, %v157_v42, -1.0 }
 0x3c4   :  { %vm177_vm11 = vcmp.ge.f32.partialorder %v175_v58, 5.0  ;;  %vm176_vm12 = vcmp.lt.f32.partialorder %v166_v59, 0.0 }
 0x3c5   :  { %vm178_vm13 = vmand %vm176_vm12, %vm177_vm11  ;;  %v187_v60 = vpop.xlane.xlu1 %186  ;;  %v200_v63 = vpop.xlane.xlu0 %199 }
 0x3c6   :  { %v188_v61 = vadd.f32 %v187_v60, %v175_v58  ;;  %v179_v62 = vsel %vm178_vm13, %v170_v44, %v166_v59 }
 0x3c7   :  { %vm189_vm14 = vcmp.lt.f32.partialorder %v179_v62, 0.0 }
 0x3c8   :  { %vm190_vm15 = vcmp.ge.f32.partialorder %v188_v61, 5.0  ;;  %v201_v1 = vadd.f32 %v200_v63, %v188_v61 }
 0x3c9   :  { %vm191_vm0 = vmand %vm189_vm14, %vm190_vm15 }
 0x3ca   :  { %v192_v0 = vsel %vm191_vm0, %v183_v46, %v179_v62  ;;  %vm203_vm2 = vcmp.ge.f32.partialorder %v201_v1, 5.0 }
 0x3cb   :  { %vm202_vm1 = vcmp.lt.f32.partialorder %v192_v0, 0.0 }
 0x3cc   :  { %vm204_vm3 = vmand %vm202_vm1, %vm203_vm2 }
 0x3cd   :  { %v205_v2 = vsel %vm204_vm3, %v196_v50, %v192_v0 }
 0x3ce   :  { %vm215_vm4 = vcmp.lt.f32.partialorder %v205_v2, 0.0 }
 0x448   :  { %v213_v3 = vpop.xlane.xlu1 %212 }
 0x449   :  { %v214_v4 = vadd.f32 %v213_v3, %v201_v1 }
 0x44b   :  { %vm216_vm6 = vcmp.ge.f32.partialorder %v214_v4, 5.0 }
 0x44c   :  { %vm217_vm7 = vmand %vm215_vm4, %vm216_vm6 }
 0x44d   :  { %v218_v5 = vsel %vm217_vm7, %v209_v54, %v205_v2 }
 0x44e   :  { %220 = vst.msk [vmem:[%s360_s3] sm:$0xff] %vm219_vm5, %v218_v5 }
 0x44f   :  { %311 = dma.done.wait [#allocation4], 256  }
 0x450   :  { %312 = vsyncadd [#allocation4], 4294967040 }
 0x451   :  { %238 = vsyncpa [#allocation3], 1 }
 0x452   :  { %239 = vsyncpa [#allocation6], 1 }
 0x453   :  { %240 = vsyncpa [#allocation4], 1 }

</bundles_post_ra>
